<compile_context>
chip_gen: v7x
topology: tpu7x:2x2x1
jax: 0.10.0
libtpu: 0.0.40
codegen_flags: <defaults>
</compile_context>

<pallas_src>
import functools
from typing import NamedTuple

import jax
import jax.numpy as jnp
from jax.experimental import pallas as pl
from jax.experimental.pallas import tpu as pltpu


def _round_up(x, m):
    return ((x + m - 1) // m) * m


def _maybe_buffered(n):
    """BlockSpec kwargs requesting n-deep pipelining, if this JAX supports it."""
    try:
        pl.BlockSpec((8, 128), lambda i: (0, 0), pipeline_mode=pl.Buffered(n))
        return {"pipeline_mode": pl.Buffered(n)}
    except Exception:
        return {}


# --------------------------------------------------------------------------- #
# One-time parameter preparation (pad + cast, hoisted out of the per-call path).
# Padded weight rows/columns and padded bias/LN lanes are zero-filled, so the
# residual + LayerNorm over the padded feature axis is numerically identical to
# the unpadded module (padded lanes of z stay exactly zero).
# --------------------------------------------------------------------------- #
class FFNParams(NamedTuple):
    w1: jax.Array      # (d_p, k_p)  native dtype
    b1: jax.Array      # (1, k_p)    f32
    w2: jax.Array      # (k_p, d_p)  native dtype
    b2: jax.Array      # (1, d_p)    f32
    gamma: jax.Array   # (1, d_p)    f32
    beta: jax.Array    # (1, d_p)    f32
    d_model: int
    dim_ff: int


def prepare_ffn_params(w1, b1, w2, b2, gamma, beta):
    d_model, dim_ff = w1.shape
    assert w2.shape == (dim_ff, d_model)
    d_p = _round_up(d_model, 128)
    k_p = _round_up(dim_ff, 128)
    w1_p = jnp.pad(w1, ((0, d_p - d_model), (0, k_p - dim_ff)))
    w2_p = jnp.pad(w2, ((0, k_p - dim_ff), (0, d_p - d_model)))
    b1_p = jnp.pad(b1.astype(jnp.float32), (0, k_p - dim_ff)).reshape(1, k_p)
    b2_p = jnp.pad(b2.astype(jnp.float32), (0, d_p - d_model)).reshape(1, d_p)
    g_p = jnp.pad(gamma.astype(jnp.float32), (0, d_p - d_model)).reshape(1, d_p)
    bt_p = jnp.pad(beta.astype(jnp.float32), (0, d_p - d_model)).reshape(1, d_p)
    return FFNParams(w1_p, b1_p, w2_p, b2_p, g_p, bt_p, int(d_model), int(dim_ff))


# --------------------------------------------------------------------------- #
# Kernels
# --------------------------------------------------------------------------- #
def _layer_norm(z, d_model, need_mask, gamma, beta):
    # Padded lanes of z are exactly zero, so a plain sum is the true sum.
    mean = jnp.sum(z, axis=-1, keepdims=True) * (1.0 / d_model)
    if need_mask:
        lane = jax.lax.broadcasted_iota(jnp.int32, z.shape, 1)
        zc = jnp.where(lane < d_model, z - mean, 0.0)
    else:
        zc = z - mean
    var = jnp.sum(zc * zc, axis=-1, keepdims=True) * (1.0 / d_model)
    inv = jax.lax.rsqrt(var + 1e-5)
    return zc * inv * gamma + beta


def _ffn_kernel_resident(d_model, need_mask,
                         x_ref, w1_ref, b1_ref, w2_ref, b2_ref, g_ref, bt_ref,
                         o_ref):
    """Weights fully VMEM-resident; whole dim_ff reduction in one shot."""
    x = x_ref[...]
    h = jnp.dot(x, w1_ref[...], preferred_element_type=jnp.float32)
    h = jnp.maximum(h + b1_ref[...], 0.0)
    y = jnp.dot(h.astype(w2_ref.dtype), w2_ref[...],
                preferred_element_type=jnp.float32)
    z = x.astype(jnp.float32) + y + b2_ref[...]
    o_ref[...] = _layer_norm(z, d_model, need_mask,
                             g_ref[...], bt_ref[...]).astype(o_ref.dtype)


def _ffn_kernel_stream(d_model, need_mask,
                       x_ref, w1_ref, b1_ref, w2_ref, b2_ref, g_ref, bt_ref,
                       o_ref, acc_ref):
    """Fallback: dim_ff streamed as a trailing 'arbitrary' reduction axis."""
    k = pl.program_id(1)
    nk = pl.num_programs(1)

    h = jnp.dot(x_ref[...], w1_ref[...], preferred_element_type=jnp.float32)
    h = jnp.maximum(h + b1_ref[...], 0.0)
    part = jnp.dot(h.astype(w2_ref.dtype), w2_ref[...],
                   preferred_element_type=jnp.float32)

    @pl.when(k == 0)
    def _():
        acc_ref[...] = part          # direct write: no zero-fill + RMW on step 0

    @pl.when(k > 0)
    def _():
        acc_ref[...] += part

    @pl.when(k == nk - 1)
    def _():
        z = x_ref[...].astype(jnp.float32) + acc_ref[...] + b2_ref[...]
        o_ref[...] = _layer_norm(z, d_model, need_mask,
                                 g_ref[...], bt_ref[...]).astype(o_ref.dtype)


# --------------------------------------------------------------------------- #
# Wrapper
# --------------------------------------------------------------------------- #
def ffn_layer(tgt, params: FFNParams, *, tm=None, tk=None, out_dtype=None,
              force_streaming=False, vmem_fraction=0.75):
    """tgt: (..., d_model). Returns same leading shape, dtype out_dtype."""
    d_model = params.d_model
    orig_shape = tgt.shape
    assert orig_shape[-1] == d_model
    rows = 1
    for s in orig_shape[:-1]:
        rows *= int(s)
    x2d = tgt.reshape(rows, d_model)

    d_p, k_p = params.w1.shape
    out_dtype = out_dtype or tgt.dtype
    need_mask = (d_p != d_model)

    x_isz = jnp.dtype(x2d.dtype).itemsize
    w_isz = jnp.dtype(params.w1.dtype).itemsize
    out_isz = jnp.dtype(out_dtype).itemsize
    sub = 16 if x2d.dtype == jnp.bfloat16 else 8

    # ---- generation-aware VMEM budget (≈48 MiB v7x, ≈96 MiB v5e/v6e) --------
    try:
        vmem_cap = int(pltpu.get_tpu_info().vmem_capacity_bytes)
    except Exception:
        vmem_cap = 64 * 1024 * 1024
    vmem_budget = int(vmem_cap * vmem_fraction)

    ln_bytes = 2 * (k_p + 3 * d_p) * 4

    def resident_est(tm_):
        return (2 * tm_ * d_p * x_isz            # x tile (double-buffered)
                + 2 * 2 * d_p * k_p * w_isz      # W1 + W2, 2 buffers each
                + 2 * tm_ * d_p * out_isz        # out tile
                + tm_ * k_p * 4                  # f32 h intermediate
                + 2 * tm_ * d_p * 4              # f32 y/z intermediates
                + ln_bytes)

    def stream_est(tm_, tk_):
        return (2 * tm_ * d_p * x_isz
                + 3 * 2 * d_p * tk_ * w_isz      # Buffered(3) weight slabs
                + 2 * tm_ * d_p * out_isz
                + tm_ * d_p * 4                  # f32 accumulator scratch
                + tm_ * tk_ * 4 + tm_ * d_p * 4  # f32 intermediates
                + ln_bytes)

    def clamp_rows(t):
        return max(sub, _round_up(min(t, _round_up(rows, sub)), sub))

    # ---- path / tile selection ----------------------------------------------
    tm_res = clamp_rows(tm if tm is not None else 256)
    use_resident = (not force_streaming) and resident_est(tm_res) <= vmem_budget

    if use_resident:
        tm_sel, tk_sel = tm_res, k_p
        vmem_est = resident_est(tm_sel)
    else:
        # Streaming fallback: big row tile so intensity 2*tm/itemsize clears
        # the ~640 FLOP/B v6e / ~620 FLOP/B-per-TC v7x compute/HBM roofline.
        tm_sel = clamp_rows(tm if tm is not None else 1024)
        tk_sel = tk if tk is not None else 256
        tk_sel = max(128, _round_up(min(tk_sel, k_p), 128))
        while k_p % tk_sel:
            tk_sel -= 128
        while stream_est(tm_sel, tk_sel) > vmem_budget and tk_sel > 128:
            tk_sel -= 128
            while k_p % tk_sel:
                tk_sel -= 128
        while stream_est(tm_sel, tk_sel) > vmem_budget and tm_sel > sub:
            tm_sel = max(sub, _round_up(tm_sel // 2, sub))
        vmem_est = stream_est(tm_sel, tk_sel)

    rows_p = _round_up(rows, tm_sel)
    n_row_tiles = rows_p // tm_sel
    # Only the activations are padded per call; weights were padded once.
    x_p = jnp.pad(x2d, ((0, rows_p - rows), (0, d_p - d_model)))

    vmem_limit = int(max(min(vmem_budget, 100 * 1024 * 1024),
                         min(vmem_est, vmem_budget)))

    weight_bytes = params.w1.nbytes + params.w2.nbytes
    cost = pl.CostEstimate(
        flops=int(4 * rows_p * d_p * k_p + 10 * rows_p * d_p),
        transcendentals=int(rows_p),
        bytes_accessed=int(x_p.nbytes
                           + weight_bytes * (1 if use_resident else n_row_tiles)
                           + params.b1.nbytes + params.b2.nbytes
                           + params.gamma.nbytes + params.beta.nbytes
                           + rows_p * d_p * out_isz),
    )

    if use_resident:
        grid = (n_row_tiles,)
        in_specs = [
            pl.BlockSpec((tm_sel, d_p), lambda i: (i, 0)),      # x row tile
            pl.BlockSpec((d_p, k_p), lambda i: (0, 0)),         # W1 (resident)
            pl.BlockSpec((1, k_p), lambda i: (0, 0)),           # b1
            pl.BlockSpec((k_p, d_p), lambda i: (0, 0)),         # W2 (resident)
            pl.BlockSpec((1, d_p), lambda i: (0, 0)),           # b2
            pl.BlockSpec((1, d_p), lambda i: (0, 0)),           # LN gamma
            pl.BlockSpec((1, d_p), lambda i: (0, 0)),           # LN beta
        ]
        out_specs = pl.BlockSpec((tm_sel, d_p), lambda i: (i, 0))
        scratch_shapes = []
        kernel = functools.partial(_ffn_kernel_resident, d_model, need_mask)
        dim_sem = ("parallel",)
    else:
        buf3 = _maybe_buffered(3)
        grid = (n_row_tiles, k_p // tk_sel)                     # reduction last
        in_specs = [
            pl.BlockSpec((tm_sel, d_p), lambda i, k: (i, 0)),           # x
            pl.BlockSpec((d_p, tk_sel), lambda i, k: (0, k), **buf3),   # W1 slab
            pl.BlockSpec((1, tk_sel), lambda i, k: (0, k)),             # b1 slab
            pl.BlockSpec((tk_sel, d_p), lambda i, k: (k, 0), **buf3),   # W2 slab
            pl.BlockSpec((1, d_p), lambda i, k: (0, 0)),                # b2
            pl.BlockSpec((1, d_p), lambda i, k: (0, 0)),                # gamma
            pl.BlockSpec((1, d_p), lambda i, k: (0, 0)),                # beta
        ]
        out_specs = pl.BlockSpec((tm_sel, d_p), lambda i, k: (i, 0))
        scratch_shapes = [pltpu.VMEM((tm_sel, d_p), jnp.float32)]
        kernel = functools.partial(_ffn_kernel_stream, d_model, need_mask)
        dim_sem = ("parallel", "arbitrary")

    out_p = pl.pallas_call(
        kernel,
        out_shape=jax.ShapeDtypeStruct((rows_p, d_p), out_dtype),
        grid_spec=pltpu.PrefetchScalarGridSpec(
            num_scalar_prefetch=0,
            grid=grid,
            in_specs=in_specs,
            out_specs=out_specs,
            scratch_shapes=scratch_shapes,
        ),
        compiler_params=pltpu.CompilerParams(
            dimension_semantics=dim_sem,
            vmem_limit_bytes=vmem_limit,
        ),
        cost_estimate=cost,
    )(x_p, params.w1, params.b1, params.w2, params.b2, params.gamma, params.beta)

    return out_p[:rows, :d_model].reshape(orig_shape[:-1] + (d_model,))


# --------------------------------------------------------------------------- #
# Self-test
# --------------------------------------------------------------------------- #
if __name__ == "__main__":
    def reference(x, w1, b1, w2, b2, gamma, beta):
        h = jnp.maximum(x @ w1 + b1, 0.0)
        y = h @ w2 + b2
        z = x + y
        mean = jnp.mean(z, axis=-1, keepdims=True)
        var = jnp.mean((z - mean) ** 2, axis=-1, keepdims=True)
        return (z - mean) / jnp.sqrt(var + 1e-5) * gamma + beta

    def xavier_uniform(key, fan_in, fan_out, shape):
        bound = (6.0 / (fan_in + fan_out)) ** 0.5
        return jax.random.uniform(key, shape, jnp.float32, -bound, bound)

    key = jax.random.PRNGKey(0)

    # ---- case 1: module-like small shapes; resident path, masked epilogue ----
    d_model, dim_ff, seq, batch = 32, 64, 8, 2
    k_x, k_w1, k_b1, k_w2, k_b2, key = jax.random.split(key, 6)
    # torch nn.Linear: weight (out,in) xavier_uniform; bias uniform(+-1/sqrt(in)).
    # Stored as (in, out) so the kernel does plain x @ W.
    w1 = xavier_uniform(k_w1, d_model, dim_ff, (d_model, dim_ff))
    b1 = jax.random.uniform(k_b1, (dim_ff,), jnp.float32,
                            -1.0 / d_model ** 0.5, 1.0 / d_model ** 0.5)
    w2 = xavier_uniform(k_w2, dim_ff, d_model, (dim_ff, d_model))
    b2 = jax.random.uniform(k_b2, (d_model,), jnp.float32,
                            -1.0 / dim_ff ** 0.5, 1.0 / dim_ff ** 0.5)
    gamma = jnp.ones((d_model,), jnp.float32)   # nn.LayerNorm default init
    beta = jnp.zeros((d_model,), jnp.float32)

    tgt = jax.random.normal(k_x, (seq, batch, d_model), jnp.float32)
    ref = reference(tgt.reshape(-1, d_model), w1, b1, w2, b2, gamma, beta)

    params = prepare_ffn_params(w1, b1, w2, b2, gamma, beta)
    out = jax.block_until_ready(ffn_layer(tgt, params))
    assert out.shape == tgt.shape
    err = float(jnp.max(jnp.abs(out.reshape(-1, d_model) - ref)))
    assert err < 2e-5, f"f32 resident max err {err}"

    # bf16 operands (native bf16 MXU rate, f32 accumulation / epilogue)
    params_bf = prepare_ffn_params(w1.astype(jnp.bfloat16), b1,
                                   w2.astype(jnp.bfloat16), b2, gamma, beta)
    out_bf = jax.block_until_ready(ffn_layer(tgt.astype(jnp.bfloat16), params_bf))
    err_bf = float(jnp.max(jnp.abs(out_bf.astype(jnp.float32).reshape(-1, d_model) - ref)))
    assert err_bf < 1e-1, f"bf16 resident max err {err_bf}"

    # ---- case 2: streaming fallback path, unmasked epilogue, multi-k reduce --
    d_model2, dim_ff2, rows2 = 128, 512, 48
    k_x2, k_w12, k_b12, k_w22, k_b22, key = jax.random.split(key, 6)
    w1b = xavier_uniform(k_w12, d_model2, dim_ff2, (d_model2, dim_ff2))
    b1b = jax.random.uniform(k_b12, (dim_ff2,), jnp.float32,
                             -1.0 / d_model2 ** 0.5, 1.0 / d_model2 ** 0.5)
    w2b = xavier_uniform(k_w22, dim_ff2, d_model2, (dim_ff2, d_model2))
    b2b = jax.random.uniform(k_b22, (d_model2,), jnp.float32,
                             -1.0 / dim_ff2 ** 0.5, 1.0 / dim_ff2 ** 0.5)
    gammab = jnp.ones((d_model2,), jnp.float32)
    betab = jnp.zeros((d_model2,), jnp.float32)
    tgt2 = jax.random.normal(k_x2, (rows2, d_model2), jnp.float32)
    ref2 = reference(tgt2, w1b, b1b, w2b, b2b, gammab, betab)

    params2 = prepare_ffn_params(w1b, b1b, w2b, b2b, gammab, betab)
    out2 = jax.block_until_ready(
        ffn_layer(tgt2, params2, tm=16, tk=128, force_streaming=True))
    err2 = float(jnp.max(jnp.abs(out2 - ref2)))
    assert err2 < 1e-3, f"f32 streaming max err {err2}"

    print("KERNEL_OK")
</pallas_src>

<mosaic_0001>
module attributes {stable_mosaic.version = 11 : i64} {
  func.func @_ffn_kernel_resident(%arg0: i32, %arg1: memref<16x128xf32, #tpu.memory_space<vmem>>, %arg2: memref<128x128xf32, #tpu.memory_space<vmem>>, %arg3: memref<1x128xf32, #tpu.memory_space<vmem>>, %arg4: memref<128x128xf32, #tpu.memory_space<vmem>>, %arg5: memref<1x128xf32, #tpu.memory_space<vmem>>, %arg6: memref<1x128xf32, #tpu.memory_space<vmem>>, %arg7: memref<1x128xf32, #tpu.memory_space<vmem>>, %arg8: memref<16x128xf32, #tpu.memory_space<vmem>>) attributes {dimension_semantics = [#tpu.dimension_semantics<parallel>], iteration_bounds = array<i64: 1>, scalar_prefetch = 0 : i64, scratch_operands = 0 : i64, tpu.core_type = #tpu.core_type<tc>, window_params = [{transform_indices = @transform_0, window_bounds = array<i64: 16, 128>}, {pipeline_mode = #tpu.pipeline_mode<synchronous>, transform_indices = @transform_1, window_bounds = array<i64: 128, 128>}, {pipeline_mode = #tpu.pipeline_mode<synchronous>, transform_indices = @transform_2, window_bounds = array<i64: 1, 128>}, {pipeline_mode = #tpu.pipeline_mode<synchronous>, transform_indices = @transform_3, window_bounds = array<i64: 128, 128>}, {pipeline_mode = #tpu.pipeline_mode<synchronous>, transform_indices = @transform_4, window_bounds = array<i64: 1, 128>}, {pipeline_mode = #tpu.pipeline_mode<synchronous>, transform_indices = @transform_5, window_bounds = array<i64: 1, 128>}, {pipeline_mode = #tpu.pipeline_mode<synchronous>, transform_indices = @transform_6, window_bounds = array<i64: 1, 128>}, {transform_indices = @transform_7, window_bounds = array<i64: 16, 128>}]} {
    %c0 = arith.constant 0 : index
    %c0_0 = arith.constant 0 : index
    %0 = vector.load %arg1[%c0, %c0_0] : memref<16x128xf32, #tpu.memory_space<vmem>>, vector<16x128xf32>
    %c0_1 = arith.constant 0 : index
    %c0_2 = arith.constant 0 : index
    %1 = vector.load %arg2[%c0_1, %c0_2] : memref<128x128xf32, #tpu.memory_space<vmem>>, vector<128x128xf32>
    %cst = arith.constant dense<0.000000e+00> : vector<16x128xf32>
    %2 = tpu.matmul %0, %1, %cst {dimension_numbers = #tpu.dot_dimension_numbers<[1], [0], [0], [1], [0, 0, 1, 1], [], []>} : vector<16x128xf32>, vector<128x128xf32>, vector<16x128xf32> -> vector<16x128xf32>
    %c0_3 = arith.constant 0 : index
    %c0_4 = arith.constant 0 : index
    %3 = vector.load %arg3[%c0_3, %c0_4] : memref<1x128xf32, #tpu.memory_space<vmem>>, vector<1x128xf32>
    %4 = vector.broadcast %3 : vector<1x128xf32> to vector<16x128xf32>
    %5 = arith.addf %2, %4 : vector<16x128xf32>
    %cst_5 = arith.constant 0.000000e+00 : f32
    %6 = vector.broadcast %cst_5 : f32 to vector<16x128xf32>
    %7 = arith.maximumf %5, %6 : vector<16x128xf32>
    %c0_6 = arith.constant 0 : index
    %c0_7 = arith.constant 0 : index
    %8 = vector.load %arg4[%c0_6, %c0_7] : memref<128x128xf32, #tpu.memory_space<vmem>>, vector<128x128xf32>
    %cst_8 = arith.constant dense<0.000000e+00> : vector<16x128xf32>
    %9 = tpu.matmul %7, %8, %cst_8 {dimension_numbers = #tpu.dot_dimension_numbers<[1], [0], [0], [1], [0, 0, 1, 1], [], []>} : vector<16x128xf32>, vector<128x128xf32>, vector<16x128xf32> -> vector<16x128xf32>
    %10 = arith.addf %0, %9 : vector<16x128xf32>
    %c0_9 = arith.constant 0 : index
    %c0_10 = arith.constant 0 : index
    %11 = vector.load %arg5[%c0_9, %c0_10] : memref<1x128xf32, #tpu.memory_space<vmem>>, vector<1x128xf32>
    %12 = vector.broadcast %11 : vector<1x128xf32> to vector<16x128xf32>
    %13 = arith.addf %10, %12 : vector<16x128xf32>
    %c0_11 = arith.constant 0 : index
    %c0_12 = arith.constant 0 : index
    %14 = vector.load %arg6[%c0_11, %c0_12] : memref<1x128xf32, #tpu.memory_space<vmem>>, vector<1x128xf32>
    %c0_13 = arith.constant 0 : index
    %c0_14 = arith.constant 0 : index
    %15 = vector.load %arg7[%c0_13, %c0_14] : memref<1x128xf32, #tpu.memory_space<vmem>>, vector<1x128xf32>
    %cst_15 = arith.constant dense<0.000000e+00> : vector<16xf32>
    %16 = vector.multi_reduction <add>, %13, %cst_15 [1] : vector<16x128xf32> to vector<16xf32>
    %17 = vector.shape_cast %16 : vector<16xf32> to vector<16x1xf32>
    %cst_16 = arith.constant 3.125000e-02 : f32
    %18 = vector.broadcast %cst_16 : f32 to vector<16x1xf32>
    %19 = arith.mulf %17, %18 : vector<16x1xf32>
    %20 = tpu.iota {dimensions = array<i32: 1>} : vector<16x128xi32>
    %c32_i32 = arith.constant 32 : i32
    %21 = vector.broadcast %c32_i32 : i32 to vector<16x128xi32>
    %22 = arith.cmpi slt, %20, %21 : vector<16x128xi32>
    %23 = vector.broadcast %19 : vector<16x1xf32> to vector<16x128xf32>
    %24 = arith.subf %13, %23 : vector<16x128xf32>
    %cst_17 = arith.constant 0.000000e+00 : f32
    %25 = vector.broadcast %cst_17 : f32 to vector<16x128xf32>
    %26 = arith.select %22, %24, %25 : vector<16x128xi1>, vector<16x128xf32>
    %27 = arith.mulf %26, %26 : vector<16x128xf32>
    %cst_18 = arith.constant dense<0.000000e+00> : vector<16xf32>
    %28 = vector.multi_reduction <add>, %27, %cst_18 [1] : vector<16x128xf32> to vector<16xf32>
    %29 = vector.shape_cast %28 : vector<16xf32> to vector<16x1xf32>
    %cst_19 = arith.constant 3.125000e-02 : f32
    %30 = vector.broadcast %cst_19 : f32 to vector<16x1xf32>
    %31 = arith.mulf %29, %30 : vector<16x1xf32>
    %cst_20 = arith.constant 9.99999974E-6 : f32
    %32 = vector.broadcast %cst_20 : f32 to vector<16x1xf32>
    %33 = arith.addf %31, %32 : vector<16x1xf32>
    %34 = math.rsqrt %33 : vector<16x1xf32>
    %35 = vector.broadcast %34 : vector<16x1xf32> to vector<16x128xf32>
    %36 = arith.mulf %26, %35 : vector<16x128xf32>
    %37 = vector.broadcast %14 : vector<1x128xf32> to vector<16x128xf32>
    %38 = arith.mulf %36, %37 : vector<16x128xf32>
    %39 = vector.broadcast %15 : vector<1x128xf32> to vector<16x128xf32>
    %40 = arith.addf %38, %39 : vector<16x128xf32>
    %c0_21 = arith.constant 0 : index
    %c0_22 = arith.constant 0 : index
    %41 = vector.load %arg8[%c0_21, %c0_22] : memref<16x128xf32, #tpu.memory_space<vmem>>, vector<16x128xf32>
    tpu.vector_store %arg8[%c0_21, %c0_22], %40 {strides = array<i32>} : memref<16x128xf32, #tpu.memory_space<vmem>>, vector<16x128xf32>,
    return
  }
  func.func @transform_0(%arg0: i32) -> (i32, i32) {
    %c0_i32 = arith.constant 0 : i32
    %c0_i32_0 = arith.constant 0 : i32
    return %arg0, %c0_i32 : i32, i32
  }
  func.func @transform_1(%arg0: i32) -> (i32, i32) {
    %c0_i32 = arith.constant 0 : i32
    %c0_i32_0 = arith.constant 0 : i32
    %c0_i32_1 = arith.constant 0 : i32
    return %c0_i32, %c0_i32_0 : i32, i32
  }
  func.func @transform_2(%arg0: i32) -> (i32, i32) {
    %c0_i32 = arith.constant 0 : i32
    %c0_i32_0 = arith.constant 0 : i32
    %c0_i32_1 = arith.constant 0 : i32
    return %c0_i32, %c0_i32_0 : i32, i32
  }
  func.func @transform_3(%arg0: i32) -> (i32, i32) {
    %c0_i32 = arith.constant 0 : i32
    %c0_i32_0 = arith.constant 0 : i32
    %c0_i32_1 = arith.constant 0 : i32
    return %c0_i32, %c0_i32_0 : i32, i32
  }
  func.func @transform_4(%arg0: i32) -> (i32, i32) {
    %c0_i32 = arith.constant 0 : i32
    %c0_i32_0 = arith.constant 0 : i32
    %c0_i32_1 = arith.constant 0 : i32
    return %c0_i32, %c0_i32_0 : i32, i32
  }
  func.func @transform_5(%arg0: i32) -> (i32, i32) {
    %c0_i32 = arith.constant 0 : i32
    %c0_i32_0 = arith.constant 0 : i32
    %c0_i32_1 = arith.constant 0 : i32
    return %c0_i32, %c0_i32_0 : i32, i32
  }
  func.func @transform_6(%arg0: i32) -> (i32, i32) {
    %c0_i32 = arith.constant 0 : i32
    %c0_i32_0 = arith.constant 0 : i32
    %c0_i32_1 = arith.constant 0 : i32
    return %c0_i32, %c0_i32_0 : i32, i32
  }
  func.func @transform_7(%arg0: i32) -> (i32, i32) {
    %c0_i32 = arith.constant 0 : i32
    %c0_i32_0 = arith.constant 0 : i32
    return %arg0, %c0_i32 : i32, i32
  }
}

</mosaic_0001>

<bundles_post_ra>
// kernel: tpu_custom_call.1
= control target key start
LH: loop header
LB: loop body
LE: loop exit
PB: predicated region body
PF: predicated region fallthrough
CT: control target
= control target key end

     0   :  { %12 = vsyncpa [#allocation3], 0  ;;  %s744_s0 = inlined_call_operand.hbm [shape: f32[16,128], index: 0, kind: input, shape index: {}]   ;;  %s745_s1 = inlined_call_operand.hbm [shape: f32[128,128], index: 1, kind: input, shape index: {}]   ;;  %s746_s2 = inlined_call_operand.vmem [shape: f32[1,128], index: 2, kind: input, shape index: {}]   ;;  %s747_s3 = inlined_call_operand.hbm [shape: f32[128,128], index: 3, kind: input, shape index: {}]   ;;  %s748_s4 = inlined_call_operand.vmem [shape: f32[1,128], index: 4, kind: input, shape index: {}]   ;;  %s749_s5 = inlined_call_operand.vmem [shape: f32[1,128], index: 5, kind: input, shape index: {}]   ;;  %s750_s6 = inlined_call_operand.vmem [shape: f32[1,128], index: 6, kind: input, shape index: {}]   ;;  %s751_s7 = inlined_call_operand.hbm [shape: f32[16,128], index: 7, kind: output, shape index: {}]  }
   0x1   :  { %13 = vsyncpa [#allocation6], 0 }
   0x2   :  { %14 = vsyncpa [#allocation4], 0  ;;  %s615_s24 = smov [#allocation5]   ;;  %s616_s26 = smov [#allocation2]  }
   0x3   :  { %s32_s25 = sshll.u32 %s615_s24, 4  ;;  %s20_s27 = sshll.u32 %s616_s26, 4  ;;  %s33_s25 = int_to_ptr.vmem [resolvable:$true] %s32_s25  ;;  %s661_s27 = int_to_ptr.vmem [resolvable:$true] %s20_s27 }
   0x4   :  { %s521_s30 = scalar_lea.hbm %s745_s1, 2048 }
   0x5   :  { %p522_p0 = scmp.ne.s32.totalorder %s745_s1, %s521_s30  ;;  %p525_p1 = scmp.lt.u32.totalorder %s521_s30, %s745_s1 }
   0x7   :  { %p527_p2 = pnand %p525_p1, %p522_p0 }
   0x9   :  { %530 = shalt.err (!%p527_p2)
}
   0xa   :  { %s531_s12 = scalar_lea.vmem %s33_s25, 2048  ;;  %p536_p4 = scmp.lt.s32.totalorder %s33_s25, %s33_s25 }
   0xb   :  { %p532_p3 = scmp.ne.s32.totalorder %s33_s25, %s531_s12  ;;  %p537_p5 = scmp.lt.s32.totalorder %s531_s12, %s531_s12 }
   0xd   :  { %p538_p6 = por %p537_p5, %p536_p4 }
   0xf   :  { %p539_p7 = pnand %p538_p6, %p532_p3 }
  0x11   :  { %542 = shalt.err (!%p539_p7)
}
  0x12   :  { %s617_s13 = smov 128   ;;  %s618_s14 = smov 8  }
  0x13   :  { %38 = dma.hbm_to_vmem [thread:$0]  %s745_s1, 2048, %s33_s25, [#allocation6], %s617_s13, %s617_s13, %s618_s14  }
  0x14   :  { %s543_s19 = scalar_lea.hbm %s744_s0, 256 }
  0x15   :  { %p544_p8 = scmp.ne.s32.totalorder %s744_s0, %s543_s19  ;;  %p547_p9 = scmp.lt.u32.totalorder %s543_s19, %s744_s0 }
  0x17   :  { %p549_p10 = pnand %p547_p9, %p544_p8 }
  0x19   :  { %552 = shalt.err (!%p549_p10)
}
  0x1a   :  { %s553_s24 = scalar_lea.vmem %s661_s27, 256  ;;  %p558_p12 = scmp.lt.s32.totalorder %s661_s27, %s661_s27 }
  0x1b   :  { %p554_p11 = scmp.ne.s32.totalorder %s661_s27, %s553_s24  ;;  %p559_p13 = scmp.lt.s32.totalorder %s553_s24, %s553_s24 }
  0x1d   :  { %p560_p0 = por %p559_p13, %p558_p12 }
  0x1f   :  { %p561_p1 = pnand %p560_p0, %p554_p11 }
  0x21   :  { %564 = shalt.err (!%p561_p1)
}
  0x22   :  { %26 = dma.hbm_to_vmem [thread:$0]  %s744_s0, 256, %s661_s27, [#allocation3], %s617_s13, %s617_s13, %s618_s14  }
  0x23   :  { %s619_s26 = smov [#allocation7]   ;;  %s565_s8 = scalar_lea.hbm %s747_s3, 2048 }
  0x24   :  { %s46_s28 = sshll.u32 %s619_s26, 4  ;;  %p566_p2 = scmp.ne.s32.totalorder %s747_s3, %s565_s8  ;;  %s47_s28 = int_to_ptr.vmem [resolvable:$true] %s46_s28 }
  0x25   :  { %p569_p3 = scmp.lt.u32.totalorder %s565_s8, %s747_s3 }
  0x27   :  { %p571_p4 = pnand %p569_p3, %p566_p2 }
  0x29   :  { %574 = shalt.err (!%p571_p4)
}
  0x2a   :  { %s575_s15 = scalar_lea.vmem %s47_s28, 2048  ;;  %p580_p6 = scmp.lt.s32.totalorder %s47_s28, %s47_s28 }
  0x2b   :  { %p576_p5 = scmp.ne.s32.totalorder %s47_s28, %s575_s15  ;;  %p581_p7 = scmp.lt.s32.totalorder %s575_s15, %s575_s15 }
  0x2d   :  { %p582_p8 = por %p581_p7, %p580_p6 }
  0x2f   :  { %p583_p9 = pnand %p582_p8, %p576_p5 }
  0x31   :  { %586 = shalt.err (!%p583_p9)
}
  0x32   :  { %52 = dma.hbm_to_vmem [thread:$0]  %s747_s3, 2048, %s47_s28, [#allocation6], %s617_s13, %s617_s13, %s618_s14  }
  0x33   :  { %609 = dma.done.wait [#allocation3], 256  }
  0x34   :  { %610 = vsyncadd [#allocation3], 4294967040 }
  0x35   :  { %611 = dma.done.wait [#allocation6], 4096  }
  0x36   :  { %612 = vsyncadd [#allocation6], 4294963200  ;;  %v70_v0 = vld [vmem:[#allocation5] sm:$0xff]  ;;  %v71_v1 = vld [vmem:[#allocation5 + $0x8] sm:$0xff]  ;;  %s620_s21 = smov [#allocation8]  }
  0x37   :  { %v72_v2 = vld [vmem:[#allocation5 + $0x10] sm:$0xff]  ;;  %v447_v3 = vpack.c.bf16 %v71_v1, %v70_v0  ;;  %v73_v4 = vld [vmem:[#allocation5 + $0x18] sm:$0xff]  ;;  %v74_v6 = vld [vmem:[#allocation5 + $0x20] sm:$0xff]  ;;  %v280_v0 = vlaneseq  ;;  %s324_s22 = sshll.u32 %s620_s21, 4  ;;  %s325_s22 = int_to_ptr.vmem [resolvable:$true] %s324_s22 }
  0x38   :  { %v451_v5 = vpack.c.bf16 %v73_v4, %v72_v2  ;;  %v75_v7 = vld [vmem:[#allocation5 + $0x28] sm:$0xff]  ;;  %v76_v9 = vld [vmem:[#allocation5 + $0x30] sm:$0xff]  ;;  %v77_v10 = vld [vmem:[#allocation5 + $0x38] sm:$0xff]  ;;  %s587_s23 = scalar_lea.vmem %s325_s22, 256  ;;  %p592_p11 = scmp.lt.s32.totalorder %s325_s22, %s325_s22 }
  0x39   :  { %448 = vmatprep.subr.bf16.mxu0 %v447_v3  ;;  %v455_v8 = vpack.c.bf16 %v75_v7, %v74_v6  ;;  %v713_v11 = vld [vmem:[#allocation2] sm:$0xff]  ;;  %v170_v12 = vld [vmem:[#allocation7] sm:$0xff]  ;;  %v171_v13 = vld [vmem:[#allocation7 + $0x8] sm:$0xff]  ;;  %v459_v20 = vpack.c.bf16 %v77_v10, %v76_v9  ;;  %v281_v1 = vand.u32 127, %v280_v0  ;;  %p588_p10 = scmp.ne.s32.totalorder %s325_s22, %s587_s23  ;;  %p593_p12 = scmp.lt.s32.totalorder %s587_s23, %s587_s23 }
  0x3a   :  { %450 = vmatpush3.bf16.msra.mxu0 %v447_v3  ;;  %409 = vmatprep.mubr.f32.mxu0 %v713_v11  ;;  %v172_v14 = vld [vmem:[#allocation7 + $0x10] sm:$0xff]  ;;  %v479_v15 = vpack.c.bf16 %v171_v13, %v170_v12  ;;  %v173_v16 = vld [vmem:[#allocation7 + $0x18] sm:$0xff]  ;;  %v174_v18 = vld [vmem:[#allocation7 + $0x20] sm:$0xff] }
  0x3b   :  { %452 = vmatprep.subr.bf16.mxu0 %v451_v5  ;;  %v483_v17 = vpack.c.bf16 %v173_v16, %v172_v14  ;;  %v175_v19 = vld [vmem:[#allocation7 + $0x28] sm:$0xff]  ;;  %v78_v21 = vld [vmem:[#allocation5 + $0x40] sm:$0xff]  ;;  %v176_v24 = vld [vmem:[#allocation7 + $0x30] sm:$0xff]  ;;  %vm282_vm0 = vcmp.lt.s32.totalorder %v281_v1, 32  ;;  %p594_p13 = por %p593_p12, %p592_p11 }
  0x3c   :  { %480 = vmatprep.subr.bf16.mxu1 %v479_v15  ;;  %v79_v22 = vld [vmem:[#allocation5 + $0x48] sm:$0xff]  ;;  %v487_v23 = vpack.c.bf16 %v175_v19, %v174_v18  ;;  %v177_v25 = vld [vmem:[#allocation7 + $0x38] sm:$0xff]  ;;  %v80_v27 = vld [vmem:[#allocation5 + $0x50] sm:$0xff] }
  0x3d   :  { %482 = vmatpush3.bf16.msra.mxu1 %v479_v15  ;;  %v463_v26 = vpack.c.bf16 %v79_v22, %v78_v21  ;;  %v81_v28 = vld [vmem:[#allocation5 + $0x58] sm:$0xff]  ;;  %v491_v29 = vpack.c.bf16 %v177_v25, %v176_v24  ;;  %v178_v30 = vld [vmem:[#allocation7 + $0x40] sm:$0xff]  ;;  %v179_v31 = vld [vmem:[#allocation7 + $0x48] sm:$0xff]  ;;  %p595_p0 = pnand %p594_p13, %p588_p10 }
  0x3e   :  { %454 = vmatpush3.bf16.msra.mxu0 %v451_v5  ;;  %484 = vmatprep.subr.bf16.mxu1 %v483_v17  ;;  %v467_v32 = vpack.c.bf16 %v81_v28, %v80_v27  ;;  %v82_v33 = vld [vmem:[#allocation5 + $0x60] sm:$0xff]  ;;  %v83_v34 = vld [vmem:[#allocation5 + $0x68] sm:$0xff]  ;;  %v495_v35 = vpack.c.bf16 %v179_v31, %v178_v30  ;;  %v180_v36 = vld [vmem:[#allocation7 + $0x50] sm:$0xff] }
  0x3f   :  { %456 = vmatprep.subr.bf16.mxu0 %v455_v8  ;;  %v181_v37 = vld [vmem:[#allocation7 + $0x58] sm:$0xff]  ;;  %v471_v38 = vpack.c.bf16 %v83_v34, %v82_v33  ;;  %v84_v39 = vld [vmem:[#allocation5 + $0x70] sm:$0xff]  ;;  %v182_v42 = vld [vmem:[#allocation7 + $0x60] sm:$0xff] }
  0x40   :  { %v85_v40 = vld [vmem:[#allocation5 + $0x78] sm:$0xff]  ;;  %v499_v41 = vpack.c.bf16 %v181_v37, %v180_v36  ;;  %v183_v43 = vld [vmem:[#allocation7 + $0x68] sm:$0xff]  ;;  %v184_v47 = vld [vmem:[#allocation7 + $0x70] sm:$0xff] }
  0x41   :  { %486 = vmatpush3.bf16.msra.mxu1 %v483_v17  ;;  %v475_v44 = vpack.c.bf16 %v85_v40, %v84_v39  ;;  %v503_v45 = vpack.c.bf16 %v183_v43, %v182_v42  ;;  %v69_v46 = vld [vmem:[#allocation2 + $0x8] sm:$0xff]  ;;  %v337_v50 = vld [vmem:[%s746_s2] ss:$0 sm:$0xff] }
  0x42   :  { %458 = vmatpush3.bf16.msra.mxu0 %v455_v8  ;;  %488 = vmatprep.subr.bf16.mxu1 %v487_v23  ;;  %v185_v48 = vld [vmem:[#allocation7 + $0x78] sm:$0xff]  ;;  %v338_v59 = vld [vmem:[%s748_s4] ss:$0 sm:$0xff] }
  0x43   :  { %460 = vmatprep.subr.bf16.mxu0 %v459_v20  ;;  %v507_v49 = vpack.c.bf16 %v185_v48, %v184_v47  ;;  %v339_v19 = vld [vmem:[%s749_s5] ss:$0 sm:$0xff] }
  0x44   :  { %v340_v21 = vld [vmem:[%s750_s6] ss:$0 sm:$0xff] }
  0x45   :  { %490 = vmatpush3.bf16.msra.mxu1 %v487_v23 }
  0x46   :  { %462 = vmatpush3.bf16.msra.mxu0 %v459_v20  ;;  %492 = vmatprep.subr.bf16.mxu1 %v491_v29 }
  0x47   :  { %464 = vmatprep.subr.bf16.mxu0 %v463_v26 }
  0x49   :  { %494 = vmatpush3.bf16.msra.mxu1 %v491_v29 }
  0x4a   :  { %466 = vmatpush3.bf16.msra.mxu0 %v463_v26  ;;  %496 = vmatprep.subr.bf16.mxu1 %v495_v35 }
  0x4b   :  { %468 = vmatprep.subr.bf16.mxu0 %v467_v32 }
  0x4d   :  { %498 = vmatpush3.bf16.msra.mxu1 %v495_v35 }
  0x4e   :  { %470 = vmatpush3.bf16.msra.mxu0 %v467_v32  ;;  %500 = vmatprep.subr.bf16.mxu1 %v499_v41 }
  0x4f   :  { %472 = vmatprep.subr.bf16.mxu0 %v471_v38 }
  0x51   :  { %502 = vmatpush3.bf16.msra.mxu1 %v499_v41 }
  0x52   :  { %474 = vmatpush3.bf16.msra.mxu0 %v471_v38  ;;  %504 = vmatprep.subr.bf16.mxu1 %v503_v45 }
  0x53   :  { %476 = vmatprep.subr.bf16.mxu0 %v475_v44 }
  0x55   :  { %506 = vmatpush3.bf16.msra.mxu1 %v503_v45 }
  0x56   :  { %478 = vmatpush3.bf16.msra.mxu0 %v475_v44  ;;  %508 = vmatprep.subr.bf16.mxu1 %v507_v49 }
  0x59   :  { %410 = vmatmul.mubr.f32.vlgmr.msra.gmra.mrb[0].mxu0 %v69_v46  ;;  %510 = vmatpush3.bf16.msra.mxu1 %v507_v49 }
 0x12c   :  { %v411_v51 = vpop.f32.mrb[0].mxu0 }
 0x12d   :  { %v165_v52 = vadd.f32 %v411_v51, %v337_v50  ;;  %v159_v53 = vpop.f32.mrb[1].mxu0 }
 0x12e   :  { %v160_v54 = vadd.f32 %v337_v50, %v159_v53 }
 0x12f   :  { %v169_v56 = vmax.f32 %v165_v52, 0.0 }
 0x130   :  { %v168_v55 = vmax.f32 %v160_v54, 0.0 }
 0x132   :  { %444 = vmatprep.mubr.f32.mxu1 %v168_v55 }
 0x133   :  { %445 = vmatmul.mubr.f32.vlgmr.msra.gmra.mrb[0].mxu1 %v169_v56 }
 0x206   :  { %v446_v57 = vpop.f32.mrb[0].mxu1 }
 0x207   :  { %v252_v58 = vpop.f32.mrb[1].mxu1  ;;  %v262_v61 = vadd.f32 %v446_v57, %v69_v46 }
 0x208   :  { %v261_v60 = vadd.f32 %v252_v58, %v713_v11 }
 0x209   :  { %v271_v63 = vadd.f32 %v338_v59, %v262_v61 }
 0x20a   :  { %v270_v62 = vadd.f32 %v338_v59, %v261_v60 }
 0x20c   :  { %274 = vadd.xlane.f32.xlu0 %v270_v62 }
 0x210   :  { %276 = vadd.xlane.f32.xlu0 %v271_v63 }
 0x299   :  { %v275_v2 = vpop.xlane.xlu0 %274 }
 0x29a   :  { %v278_v3 = vmul.f32 0.03125, %v275_v2 }
 0x29c   :  { %v283_v4 = vsub.f32 %v270_v62, %v278_v3 }
 0x29d   :  { %v277_v5 = vpop.xlane.xlu0 %276 }
 0x29e   :  { %v279_v6 = vmul.f32 0.03125, %v277_v5  ;;  %v285_v7 = vsel %vm282_vm0, %v283_v4, 0.0 }
 0x29f   :  { %v287_v8 = vmul.f32 %v285_v7, %v285_v7 }
 0x2a0   :  { %v284_v9 = vsub.f32 %v271_v63, %v279_v6 }
 0x2a1   :  { %289 = vadd.xlane.f32.xlu1 %v287_v8 }
 0x2a2   :  { %v286_v10 = vsel %vm282_vm0, %v284_v9, 0.0 }
 0x2a3   :  { %v288_v12 = vmul.f32 %v286_v10, %v286_v10 }
 0x2a5   :  { %291 = vadd.xlane.f32.xlu1 %v288_v12 }
 0x32e   :  { %v290_v11 = vpop.xlane.xlu1 %289 }
 0x32f   :  { %v293_v13 = vmul.f32 0.03125, %v290_v11 }
 0x331   :  { %v295_v14 = vadd.f32 1e-05, %v293_v13 }
 0x332   :  { %v292_v15 = vpop.xlane.xlu1 %291 }
 0x333   :  { %517 = vrsqrt.f32 %v295_v14  ;;  %v294_v16 = vmul.f32 0.03125, %v292_v15 }
 0x335   :  { %v296_v17 = vadd.f32 1e-05, %v294_v16 }
 0x337   :  { %519 = vrsqrt.f32 %v296_v17 }
 0x33d   :  { %v518_v18 = vpop.eup %517 }
 0x33e   :  { %v299_v20 = vmul.f32 %v518_v18, %v285_v7 }
 0x340   :  { %v307_v22 = vmul.f32 %v339_v19, %v299_v20 }
 0x341   :  { %v520_v23 = vpop.eup %519 }
 0x342   :  { %v300_v24 = vmul.f32 %v520_v23, %v286_v10  ;;  %v315_v25 = vadd.f32 %v340_v21, %v307_v22 }
 0x344   :  { %v308_v26 = vmul.f32 %v339_v19, %v300_v24  ;;  %317 = vst [vmem:[#allocation8] sm:$0xff] %v315_v25 }
 0x346   :  { %v316_v27 = vadd.f32 %v340_v21, %v308_v26 }
 0x348   :  { %318 = vst [vmem:[#allocation8 + $0x8] sm:$0xff] %v316_v27 }
 0x349   :  { %598 = shalt.err (!%p595_p0)
}
 0x34a   :  { %s599_s24 = scalar_lea.hbm %s751_s7, 256 }
 0x34b   :  { %p600_p1 = scmp.ne.s32.totalorder %s751_s7, %s599_s24  ;;  %p603_p2 = scmp.lt.u32.totalorder %s599_s24, %s751_s7 }
 0x34d   :  { %p605_p3 = pnand %p603_p2, %p600_p1 }
 0x34f   :  { %608 = shalt.err (!%p605_p3)
}
 0x350   :  { %330 = dma.vmem_to_hbm [thread:$0]  %s325_s22, 256, %s751_s7, [#allocation4], %s617_s13, %s617_s13, %s618_s14  }
 0x351   :  { %613 = dma.done.wait [#allocation4], 256  }
 0x352   :  { %614 = vsyncadd [#allocation4], 4294967040 }
 0x353   :  { %334 = vsyncpa [#allocation3], 1 }
 0x354   :  { %335 = vsyncpa [#allocation6], 1 }
 0x355   :  { %336 = vsyncpa [#allocation4], 1 }

</bundles_post_ra>
